<compile_context>
chip_gen: v7x
topology: tpu7x:2x2x1
jax: 0.10.0
libtpu: 0.0.40
codegen_flags: <defaults>
</compile_context>

<pallas_src>
import jax
import jax.numpy as jnp
import numpy as np
from jax.experimental import pallas as pl
from jax.experimental.pallas import tpu as pltpu


def _round_up(x, m):
    return ((x + m - 1) // m) * m


def binary_cnn_forward(x_nchw, conv_w_oihw, conv_b, fc_w, fc_b,
                       *, batch_block=None, compute_dtype=jnp.bfloat16):
    """x_nchw: (N,3,H,W); conv_w_oihw: (Cout,Cin,3,3); fc_w: (1, Cout*Ho*Wo) in PyTorch
    NCHW-flatten order; fc_b: (1,).  Returns (N, 1) sigmoid outputs.
    compute_dtype=bf16 (default) keeps f32 accumulation for the conv and the FC sum."""
    n, cin, h, w = x_nchw.shape
    cout = conv_w_oihw.shape[0]
    assert h % 2 == 0 and w % 2 == 0, "2x2/stride-2 pooling assumes even H, W"
    ho, wo = h // 2, w // 2

    if batch_block is None:
        # 2-4 images per step when the batch allows it, but keep >=2 parallel grid steps
        # so both v7x TensorCores stay busy.
        batch_block = next((nb for nb in (4, 2) if n % nb == 0 and n // nb >= 2), 1)
    nb = batch_block
    assert n % nb == 0, "batch_block must divide the batch"

    f32 = jnp.float32
    cinp = _round_up(max(cin, 1), 4)          # pad channels so 4*cinp is sublane-friendly
    c4 = 4 * cinp                             # parity-folded channel count (16 for Cin=3)
    mo = ho * (wo + 1)                        # flattened pooled positions (+1 junk col/row)
    mp = _round_up(mo, 128)                   # lane-padded position count
    lp = _round_up(mp + wo + 2, 128)          # input lanes (covers all 4 shift offsets)

    # --- glue: bf16-first, channel-major, minimal passes -------------------------------
    xb = x_nchw.astype(compute_dtype)                                     # cast FIRST
    xp = jnp.pad(xb, ((0, 0), (0, cinp - cin), (1, 1), (1, 1)))           # (N,cinp,H+2,W+2)
    # parity fold: channel k = (up*2+vp)*cinp + c  <->  x_pad[c, 2I+up, 2J+vp]
    xe = xp.reshape(n, cinp, ho + 1, 2, wo + 1, 2)
    xe = jnp.transpose(xe, (0, 3, 5, 1, 2, 4))                            # (N,up,vp,c,I,J)
    xe = xe.reshape(n, c4, (ho + 1) * (wo + 1))
    xflat = jnp.pad(xe, ((0, 0), (0, 0), (0, lp - (ho + 1) * (wo + 1))))  # (N, c4, Lp)

    # --- packed conv weights: per parity shift (uq,vq) a (4*Cout, c4) matrix -----------
    def pack_shift(uq, vq):
        rows = []
        for a in range(2):
            for b in range(2):                       # output quadrant (a,b)
                cols = []
                for up in range(2):
                    for vp in range(2):              # folded-input parity (up,vp)
                        dy = 2 * uq + up - a
                        dx = 2 * vq + vp - b
                        if 0 <= dy <= 2 and 0 <= dx <= 2:
                            wk = conv_w_oihw[:, :, dy, dx].astype(f32)    # (Cout, Cin)
                            wk = jnp.pad(wk, ((0, 0), (0, cinp - cin)))
                        else:
                            wk = jnp.zeros((cout, cinp), f32)
                        cols.append(wk)
                rows.append(jnp.concatenate(cols, axis=1))                # (Cout, c4)
        return jnp.concatenate(rows, axis=0)                              # (4*Cout, c4)

    w_pack = jnp.stack([pack_shift(0, 0), pack_shift(0, 1),
                        pack_shift(1, 0), pack_shift(1, 1)]).astype(compute_dtype)

    bc = conv_b.reshape(cout, 1).astype(f32)
    # FC weight in (channel, I*(Wo+1)+J) layout: junk / pad columns get zero weight, so the
    # garbage positions produced by the shifted slices never contribute to the logit.
    wf = fc_w.reshape(cout, ho, wo).astype(compute_dtype)
    wf = jnp.pad(wf, ((0, 0), (0, 0), (0, 1))).reshape(cout, mo)
    wf = jnp.pad(wf, ((0, 0), (0, mp - mo)))                              # (Cout, Mp)
    bf = fc_b.reshape(1, 1).astype(f32)

    shifts = (0, 1, wo + 1, wo + 2)           # (uq,vq) = (0,0),(0,1),(1,0),(1,1)

    def kernel(x_ref, wq_ref, bc_ref, wf_ref, bf_ref, out_ref):
        # x_ref : (nb, c4, Lp)      parity-folded channel-major input block
        # wq_ref: (4, 4*Cout, c4)   per-shift packed conv weights (resident)
        # bc_ref: (Cout, 1)         conv bias (f32, resident)
        # wf_ref: (Cout, Mp)        fc weight (resident, fetched once for the whole batch)
        # bf_ref: (1, 1) SMEM       fc bias
        # out_ref: (nb, 1, 128)     lane-dense sigmoid output (col 0 holds the value)
        wf32 = wf_ref[...].astype(jnp.float32)          # hoisted out of the batch loop
        bias = bc_ref[...]                              # (Cout, 1)
        logits = []
        for b in range(nb):                             # static unroll, nb is small
            xb_ = x_ref[b]                              # (c4, Lp)
            acc = None
            for si, s in enumerate(shifts):
                rhs = xb_[:, s:s + mp]                  # (c4, Mp) static lane-offset slice
                part = jnp.dot(wq_ref[si], rhs, preferred_element_type=jnp.float32)
                acc = part if acc is None else acc + part   # (4*Cout, Mp) f32
            # 2x2 max-pool = max over the four quadrant sublane groups, then bias + ReLU.
            p = jnp.maximum(jnp.maximum(acc[0:cout], acc[cout:2 * cout]),
                            jnp.maximum(acc[2 * cout:3 * cout], acc[3 * cout:4 * cout]))
            pooled = jnp.maximum(p + bias, 0.0)          # (Cout, Mp) f32
            # FC head (out_features == 1): elementwise multiply by the resident fc weight
            # and reduce in f32.
            red = jnp.sum(pooled * wf32, axis=1, keepdims=True)     # (Cout, 1)
            logits.append(jnp.sum(red, axis=0, keepdims=True))      # (1, 1)
        logit = jnp.concatenate(logits, axis=0) + bf_ref[0, 0]      # (nb, 1)
        sig = jax.nn.sigmoid(logit).reshape(nb, 1, 1)
        out_ref[...] = jnp.broadcast_to(sig, out_ref.shape)

    itemsize = jnp.dtype(compute_dtype).itemsize
    flops = n * (4 * 2 * (4 * cout) * c4 * mp + 6 * cout * mp)
    bytes_accessed = int(xflat.size * itemsize + w_pack.size * itemsize
                         + wf.size * itemsize + bc.size * 4 + bf.size * 4 + n * 128 * 4)

    out = pl.pallas_call(
        kernel,
        out_shape=jax.ShapeDtypeStruct((n, 1, 128), jnp.float32),
        grid_spec=pltpu.PrefetchScalarGridSpec(
            num_scalar_prefetch=0,
            grid=(n // nb,),
            in_specs=[
                pl.BlockSpec((nb, c4, lp), lambda i: (i, 0, 0)),        # input images
                pl.BlockSpec((4, 4 * cout, c4), lambda i: (0, 0, 0)),   # conv W (resident)
                pl.BlockSpec((cout, 1), lambda i: (0, 0)),              # conv bias (resident)
                pl.BlockSpec((cout, mp), lambda i: (0, 0)),             # fc W (resident)
                pl.BlockSpec(memory_space=pltpu.MemorySpace.SMEM),      # fc bias scalar
            ],
            out_specs=pl.BlockSpec((nb, 1, 128), lambda i: (i, 0, 0)),
        ),
        compiler_params=pltpu.CompilerParams(
            dimension_semantics=("parallel",),
            vmem_limit_bytes=32 * 1024 * 1024,
        ),
        cost_estimate=pl.CostEstimate(flops=int(flops), transcendentals=int(n),
                                      bytes_accessed=bytes_accessed),
    )(xflat, w_pack, bc, wf, bf)

    return out[:, 0, :1]                                                  # (N, 1)


def binary_cnn_reference(x_nchw, conv_w_oihw, conv_b, fc_w, fc_b):
    """Pure-JAX reference matching the PyTorch forward semantics."""
    x = jnp.transpose(x_nchw, (0, 2, 3, 1))
    wc = jnp.transpose(conv_w_oihw, (2, 3, 1, 0))
    y = jax.lax.conv_general_dilated(
        x, wc, window_strides=(1, 1), padding="SAME",
        dimension_numbers=("NHWC", "HWIO", "NHWC"))
    y = jnp.maximum(y + conv_b[None, None, None, :], 0.0)
    n, h, w, c = y.shape
    pooled = y.reshape(n, h // 2, 2, w // 2, 2, c).max(axis=(2, 4))
    flat = jnp.transpose(pooled, (0, 3, 1, 2)).reshape(n, -1)             # NCHW flatten
    logits = flat @ fc_w.T + fc_b[None, :]
    return jax.nn.sigmoid(logits)


if __name__ == "__main__":
    key = jax.random.PRNGKey(0)
    k1, k2, k3, k4, k5 = jax.random.split(key, 5)

    # Small shapes consistent with the module: Conv2d(3,16,3,p=1) -> pool/2 -> Linear(.,1)
    N, Cin, H, W, Cout = 2, 3, 16, 16, 16
    Ho, Wo = H // 2, W // 2

    x = jax.random.normal(k1, (N, Cin, H, W), jnp.float32)
    conv_w = jax.random.normal(k2, (Cout, Cin, 3, 3), jnp.float32) * 0.1
    conv_b = jax.random.normal(k3, (Cout,), jnp.float32) * 0.1
    fc_w = jax.random.normal(k4, (1, Cout * Ho * Wo), jnp.float32) * 0.02
    fc_b = jax.random.normal(k5, (1,), jnp.float32) * 0.02

    fwd = jax.jit(binary_cnn_forward, static_argnames=("batch_block", "compute_dtype"))
    ref = jax.block_until_ready(binary_cnn_reference(x, conv_w, conv_b, fc_w, fc_b))

    # Default path: bf16 streams, f32 accumulation, whole-image grid steps.
    out = jax.block_until_ready(fwd(x, conv_w, conv_b, fc_w, fc_b))
    np.testing.assert_allclose(np.asarray(out), np.asarray(ref), atol=2e-2, rtol=2e-2)

    # f32 path: tight check of the shift/quadrant weight packing, pooling and FC math.
    out_f32 = jax.block_until_ready(
        fwd(x, conv_w, conv_b, fc_w, fc_b, compute_dtype=jnp.float32))
    np.testing.assert_allclose(np.asarray(out_f32), np.asarray(ref), atol=1e-4, rtol=1e-4)

    # Batch-blocked path (2 images per grid step) on a larger batch.
    N2 = 4
    x2 = jax.random.normal(k1, (N2, Cin, H, W), jnp.float32)
    ref2 = jax.block_until_ready(binary_cnn_reference(x2, conv_w, conv_b, fc_w, fc_b))
    out2 = jax.block_until_ready(
        fwd(x2, conv_w, conv_b, fc_w, fc_b, batch_block=2, compute_dtype=jnp.float32))
    np.testing.assert_allclose(np.asarray(out2), np.asarray(ref2), atol=1e-4, rtol=1e-4)

    print("KERNEL_OK")
</pallas_src>

<mosaic_0001>
module attributes {stable_mosaic.version = 11 : i64} {
  func.func @kernel(%arg0: i32, %arg1: memref<1x16x256xbf16, #tpu.memory_space<vmem>>, %arg2: memref<4x64x16xbf16, #tpu.memory_space<vmem>>, %arg3: memref<16x1xf32, #tpu.memory_space<vmem>>, %arg4: memref<16x128xbf16, #tpu.memory_space<vmem>>, %arg5: memref<1x1xf32, #tpu.memory_space<smem>>, %arg6: memref<1x1x128xf32, #tpu.memory_space<vmem>>) attributes {dimension_semantics = [#tpu.dimension_semantics<parallel>], iteration_bounds = array<i64: 2>, scalar_prefetch = 0 : i64, scratch_operands = 0 : i64, tpu.core_type = #tpu.core_type<tc>, window_params = [{transform_indices = @transform_0, window_bounds = array<i64: 1, 16, 256>}, {pipeline_mode = #tpu.pipeline_mode<synchronous>, transform_indices = @transform_1, window_bounds = array<i64: 4, 64, 16>}, {pipeline_mode = #tpu.pipeline_mode<synchronous>, transform_indices = @transform_2, window_bounds = array<i64: 16, 1>}, {pipeline_mode = #tpu.pipeline_mode<synchronous>, transform_indices = @transform_3, window_bounds = array<i64: 16, 128>}, {transform_indices = @transform_4, window_bounds = array<i64: 1, 1>}, {transform_indices = @transform_5, window_bounds = array<i64: 1, 1, 128>}]} {
    %c0 = arith.constant 0 : index
    %c0_0 = arith.constant 0 : index
    %0 = vector.load %arg4[%c0, %c0_0] : memref<16x128xbf16, #tpu.memory_space<vmem>>, vector<16x128xbf16>
    %1 = arith.extf %0 : vector<16x128xbf16> to vector<16x128xf32>
    %c0_1 = arith.constant 0 : index
    %c0_2 = arith.constant 0 : index
    %2 = vector.load %arg3[%c0_1, %c0_2] : memref<16x1xf32, #tpu.memory_space<vmem>>, vector<16x1xf32>
    %c0_3 = arith.constant 0 : index
    %c0_4 = arith.constant 0 : index
    %c0_5 = arith.constant 0 : index
    %3 = vector.load %arg1[%c0_3, %c0_4, %c0_5] : memref<1x16x256xbf16, #tpu.memory_space<vmem>>, vector<1x16x256xbf16>
    %4 = vector.shape_cast %3 : vector<1x16x256xbf16> to vector<16x256xbf16>
    %5 = vector.extract_strided_slice %4 {offsets = [0, 0], sizes = [16, 128], strides = [1, 1]} : vector<16x256xbf16> to vector<16x128xbf16>
    %c0_6 = arith.constant 0 : index
    %c0_7 = arith.constant 0 : index
    %c0_8 = arith.constant 0 : index
    %6 = vector.load %arg2[%c0_6, %c0_7, %c0_8] : memref<4x64x16xbf16, #tpu.memory_space<vmem>>, vector<1x64x16xbf16>
    %7 = vector.shape_cast %6 : vector<1x64x16xbf16> to vector<64x16xbf16>
    %cst = arith.constant dense<0.000000e+00> : vector<64x128xf32>
    %8 = tpu.matmul %7, %5, %cst {dimension_numbers = #tpu.dot_dimension_numbers<[1], [0], [0], [1], [0, 0, 1, 1], [], []>} : vector<64x16xbf16>, vector<16x128xbf16>, vector<64x128xf32> -> vector<64x128xf32>
    %9 = vector.extract_strided_slice %4 {offsets = [0, 1], sizes = [16, 128], strides = [1, 1]} : vector<16x256xbf16> to vector<16x128xbf16>
    %c1 = arith.constant 1 : index
    %c0_9 = arith.constant 0 : index
    %c0_10 = arith.constant 0 : index
    %10 = vector.load %arg2[%c1, %c0_9, %c0_10] : memref<4x64x16xbf16, #tpu.memory_space<vmem>>, vector<1x64x16xbf16>
    %11 = vector.shape_cast %10 : vector<1x64x16xbf16> to vector<64x16xbf16>
    %cst_11 = arith.constant dense<0.000000e+00> : vector<64x128xf32>
    %12 = tpu.matmul %11, %9, %cst_11 {dimension_numbers = #tpu.dot_dimension_numbers<[1], [0], [0], [1], [0, 0, 1, 1], [], []>} : vector<64x16xbf16>, vector<16x128xbf16>, vector<64x128xf32> -> vector<64x128xf32>
    %13 = arith.addf %8, %12 : vector<64x128xf32>
    %14 = vector.extract_strided_slice %4 {offsets = [0, 9], sizes = [16, 128], strides = [1, 1]} : vector<16x256xbf16> to vector<16x128xbf16>
    %c2 = arith.constant 2 : index
    %c0_12 = arith.constant 0 : index
    %c0_13 = arith.constant 0 : index
    %15 = vector.load %arg2[%c2, %c0_12, %c0_13] : memref<4x64x16xbf16, #tpu.memory_space<vmem>>, vector<1x64x16xbf16>
    %16 = vector.shape_cast %15 : vector<1x64x16xbf16> to vector<64x16xbf16>
    %cst_14 = arith.constant dense<0.000000e+00> : vector<64x128xf32>
    %17 = tpu.matmul %16, %14, %cst_14 {dimension_numbers = #tpu.dot_dimension_numbers<[1], [0], [0], [1], [0, 0, 1, 1], [], []>} : vector<64x16xbf16>, vector<16x128xbf16>, vector<64x128xf32> -> vector<64x128xf32>
    %18 = arith.addf %13, %17 : vector<64x128xf32>
    %19 = vector.extract_strided_slice %4 {offsets = [0, 10], sizes = [16, 128], strides = [1, 1]} : vector<16x256xbf16> to vector<16x128xbf16>
    %c3 = arith.constant 3 : index
    %c0_15 = arith.constant 0 : index
    %c0_16 = arith.constant 0 : index
    %20 = vector.load %arg2[%c3, %c0_15, %c0_16] : memref<4x64x16xbf16, #tpu.memory_space<vmem>>, vector<1x64x16xbf16>
    %21 = vector.shape_cast %20 : vector<1x64x16xbf16> to vector<64x16xbf16>
    %cst_17 = arith.constant dense<0.000000e+00> : vector<64x128xf32>
    %22 = tpu.matmul %21, %19, %cst_17 {dimension_numbers = #tpu.dot_dimension_numbers<[1], [0], [0], [1], [0, 0, 1, 1], [], []>} : vector<64x16xbf16>, vector<16x128xbf16>, vector<64x128xf32> -> vector<64x128xf32>
    %23 = arith.addf %18, %22 : vector<64x128xf32>
    %24 = vector.extract_strided_slice %23 {offsets = [0, 0], sizes = [16, 128], strides = [1, 1]} : vector<64x128xf32> to vector<16x128xf32>
    %25 = vector.extract_strided_slice %23 {offsets = [16, 0], sizes = [16, 128], strides = [1, 1]} : vector<64x128xf32> to vector<16x128xf32>
    %26 = arith.maximumf %24, %25 : vector<16x128xf32>
    %27 = vector.extract_strided_slice %23 {offsets = [32, 0], sizes = [16, 128], strides = [1, 1]} : vector<64x128xf32> to vector<16x128xf32>
    %28 = vector.extract_strided_slice %23 {offsets = [48, 0], sizes = [16, 128], strides = [1, 1]} : vector<64x128xf32> to vector<16x128xf32>
    %29 = arith.maximumf %27, %28 : vector<16x128xf32>
    %30 = arith.maximumf %26, %29 : vector<16x128xf32>
    %31 = vector.broadcast %2 : vector<16x1xf32> to vector<16x128xf32>
    %32 = arith.addf %30, %31 : vector<16x128xf32>
    %cst_18 = arith.constant 0.000000e+00 : f32
    %33 = vector.broadcast %cst_18 : f32 to vector<16x128xf32>
    %34 = arith.maximumf %32, %33 : vector<16x128xf32>
    %35 = arith.mulf %34, %1 : vector<16x128xf32>
    %cst_19 = arith.constant dense<0.000000e+00> : vector<16xf32>
    %36 = vector.multi_reduction <add>, %35, %cst_19 [1] : vector<16x128xf32> to vector<16xf32>
    %37 = vector.shape_cast %36 : vector<16xf32> to vector<16x1xf32>
    %cst_20 = arith.constant dense<0.000000e+00> : vector<1xf32>
    %38 = vector.multi_reduction <add>, %37, %cst_20 [0] : vector<16x1xf32> to vector<1xf32>
    %39 = vector.shape_cast %38 : vector<1xf32> to vector<1x1xf32>
    %c0_21 = arith.constant 0 : index
    %c0_22 = arith.constant 0 : index
    %40 = memref.load %arg5[%c0_21, %c0_22] : memref<1x1xf32, #tpu.memory_space<smem>>
    %41 = vector.broadcast %40 : f32 to vector<1x1xf32>
    %42 = arith.addf %39, %41 : vector<1x1xf32>
    %43 = arith.negf %42 : vector<1x1xf32>
    %44 = math.exp %43 : vector<1x1xf32>
    %cst_23 = arith.constant 1.000000e+00 : f32
    %45 = vector.broadcast %cst_23 : f32 to vector<1x1xf32>
    %46 = arith.addf %45, %44 : vector<1x1xf32>
    %47 = arith.divf %45, %46 : vector<1x1xf32>
    %48 = vector.shape_cast %47 : vector<1x1xf32> to vector<1x1x1xf32>
    %49 = vector.shape_cast %48 : vector<1x1x1xf32> to vector<1x1x1xf32>
    %50 = vector.broadcast %49 : vector<1x1x1xf32> to vector<1x1x128xf32>
    %c0_24 = arith.constant 0 : index
    %c0_25 = arith.constant 0 : index
    %c0_26 = arith.constant 0 : index
    %51 = vector.load %arg6[%c0_24, %c0_25, %c0_26] : memref<1x1x128xf32, #tpu.memory_space<vmem>>, vector<1x1x128xf32>
    tpu.vector_store %arg6[%c0_24, %c0_25, %c0_26], %50 {strides = array<i32>} : memref<1x1x128xf32, #tpu.memory_space<vmem>>, vector<1x1x128xf32>,
    return
  }
  func.func @transform_0(%arg0: i32) -> (i32, i32, i32) {
    %c0_i32 = arith.constant 0 : i32
    %c0_i32_0 = arith.constant 0 : i32
    %c0_i32_1 = arith.constant 0 : i32
    return %arg0, %c0_i32, %c0_i32_0 : i32, i32, i32
  }
  func.func @transform_1(%arg0: i32) -> (i32, i32, i32) {
    %c0_i32 = arith.constant 0 : i32
    %c0_i32_0 = arith.constant 0 : i32
    %c0_i32_1 = arith.constant 0 : i32
    %c0_i32_2 = arith.constant 0 : i32
    return %c0_i32, %c0_i32_0, %c0_i32_1 : i32, i32, i32
  }
  func.func @transform_2(%arg0: i32) -> (i32, i32) {
    %c0_i32 = arith.constant 0 : i32
    %c0_i32_0 = arith.constant 0 : i32
    %c0_i32_1 = arith.constant 0 : i32
    return %c0_i32, %c0_i32_0 : i32, i32
  }
  func.func @transform_3(%arg0: i32) -> (i32, i32) {
    %c0_i32 = arith.constant 0 : i32
    %c0_i32_0 = arith.constant 0 : i32
    %c0_i32_1 = arith.constant 0 : i32
    return %c0_i32, %c0_i32_0 : i32, i32
  }
  func.func @transform_4(%arg0: i32) -> (i32, i32) {
    %c0_i32 = arith.constant 0 : i32
    %c0_i32_0 = arith.constant 0 : i32
    %c0_i32_1 = arith.constant 0 : i32
    return %c0_i32, %c0_i32_0 : i32, i32
  }
  func.func @transform_5(%arg0: i32) -> (i32, i32, i32) {
    %c0_i32 = arith.constant 0 : i32
    %c0_i32_0 = arith.constant 0 : i32
    %c0_i32_1 = arith.constant 0 : i32
    return %arg0, %c0_i32, %c0_i32_0 : i32, i32, i32
  }
}

</mosaic_0001>

<bundles_post_ra>
// kernel: binary_cnn_forward.1
= control target key start
LH: loop header
LB: loop body
LE: loop exit
PB: predicated region body
PF: predicated region fallthrough
CT: control target
= control target key end

     0   :  { %s1030_s20 = smov 0   ;;  %s1124_s0 = inlined_call_operand.vmem [shape: bf16[2,16,256], index: 0, kind: input, shape index: {}]   ;;  %s1125_s1 = inlined_call_operand.vmem [shape: bf16[4,64,16], index: 1, kind: input, shape index: {}]   ;;  %s1126_s2 = inlined_call_operand.vmem [shape: f32[16,1], index: 2, kind: input, shape index: {}]   ;;  %s1127_s3 = inlined_call_operand.vmem [shape: bf16[16,128], index: 3, kind: input, shape index: {}]   ;;  %s1128_s4 = inlined_call_operand.<no memory space> [shape: f32[1,1], index: 4, kind: input, shape index: {}]   ;;  %s1129_s5 = inlined_call_operand.vmem [shape: f32[2,1,128], index: 5, kind: output, shape index: {}]  }
   0x1   :  { %10 = sst [smem:[#allocation2]] %s1128_s4 }
   0x2 LB: > { %s791_s21 = sadd.s32 4294967295, %s991_s20   ;;  %p795_p0 = scmp.ge.s32.totalorder %s991_s20, 1  ;;  %s991_s20 = sphi %s1030_s20, %s16_s20  }
   0x3   : > { %p188_p1 = scmp.lt.s32.totalorder %s991_s20, 3 }
   0x5   : > { %p189_p2 = pnand %p795_p0, %p188_p1 }
   0x6   : > { %p214_p3 = scmp.lt.s32.totalorder (!%p189_p2), %s791_s21, 1  ;;  %v965_v0 = vld [vmem:[%s1125_s1 + $0x20] sm:$0xff] (!%p189_p2)   ;;  %vm283_vm0 = vcmask (!%p189_p2), 130048   ;;  %s993_s29 = smov (!%p189_p2), 119   ;;  %v228_v5 = vld [vmem:[%s1126_s2 + $0x8] sm:$0xff] (!%p189_p2)  ;;  %v996_v6 = vmov (!%p189_p2), 0  }
   0x7   : > { %192 = sbr.rel (%p189_p2) target bundleno = 578 (0x242), region = 40  ;;  %v966_v1 = vld [vmem:[%s1125_s1 + $0x40] sm:$0xff] (!%p189_p2)   ;;  %886 = vmatprep.mubr.msk.bf16.mxu1 (!%p189_p2), %vm283_vm0, %v965_v0  ;;  %s994_s30 = smov (!%p189_p2), 127   ;;  %960 = vset.pattern.permute.xlu0 (!%p189_p2), %v996_v6  ;;  %vm280_vm1 = vcmask (!%p189_p2), 1039360   ;;  %vm492_vm2 = vcmask (!%p189_p2), 973824   ;;  %v967_v13 = vld [vmem:[%s1125_s1 + $0x28] sm:$0xff] (!%p189_p2)  }
   0x8   : > { %906 = vmatprep.mubr.msk.bf16.mxu0 (!%p189_p2), %vm283_vm0, %v966_v1  ;;  %s995_s6 = smov (!%p189_p2), 118   ;;  %v227_v4 = vld [vmem:[%s1126_s2] sm:$0xff] (!%p189_p2)  ;;  %961 = vset.pattern.permute.xlu1 (!%p189_p2), %v996_v6  ;;  %v968_v14 = vld [vmem:[%s1125_s1 + $0x48] sm:$0xff] (!%p189_p2)   ;;  %vm613_vm3 = vcmask (!%p189_p2), 965632   ;;  %v969_v17 = vld [vmem:[%s1125_s1 + $0x30] sm:$0xff] (!%p189_p2)   ;;  %s734_s17 = sld [smem:[#allocation2]] (!%p189_p2) }
   0x9   : > { %v970_v19 = vld [vmem:[%s1125_s1 + $0x50] sm:$0xff] (!%p189_p2)   ;;  %v971_v20 = vld [vmem:[%s1125_s1 + $0x38] sm:$0xff] (!%p189_p2)   ;;  %v973_v22 = vld [vmem:[%s1125_s1] sm:$0xff] (!%p189_p2)  }
   0xa   : > { %v972_v21 = vld [vmem:[%s1125_s1 + $0x58] sm:$0xff] (!%p189_p2)   ;;  %v974_v23 = vld [vmem:[%s1125_s1 + $0x60] sm:$0xff] (!%p189_p2)   ;;  %v975_v24 = vld [vmem:[%s1125_s1 + $0x8] sm:$0xff] (!%p189_p2)  }
   0xb   : > { %v976_v25 = vld [vmem:[%s1125_s1 + $0x68] sm:$0xff] (!%p189_p2)   ;;  %v977_v26 = vld [vmem:[%s1125_s1 + $0x10] sm:$0xff] (!%p189_p2)   ;;  %v979_v28 = vld [vmem:[%s1125_s1 + $0x18] sm:$0xff] (!%p189_p2)  }
   0xc   : > { %v978_v27 = vld [vmem:[%s1125_s1 + $0x70] sm:$0xff] (!%p189_p2)   ;;  %v980_v29 = vld [vmem:[%s1125_s1 + $0x78] sm:$0xff] (!%p189_p2)   ;;  %v861_v58 = vld [vmem:[%s1127_s3] sm:$0xff] (!%p189_p2)  }
   0xd   : > { %v862_v0 = vunpack.c.l.bf16 (!%p189_p2), %v861_v58 }
   0xe   : > { %s1131_s21 = smov (!%p214_p3, %s791_s21), 1 }
   0xf   : > { %s859_s25 = sshll.u32 %s1131_s21, 4  ;;  %s221_s22 = scalar_lea.vmem %s1129_s5, %s1131_s21 }
  0x10   : > { %s218_s28 = scalar_lea.vmem %s1124_s0, %s859_s25 }
  0x11   : > { %v962_v2 = vld [vmem:[%s218_s28] ss:$8 sps:$4 sm:$0xff]   ;;  %v964_v3 = vld [vmem:[%s218_s28 + $0x4] ss:$8 sps:$4 sm:$0xff]  }
  0x12   : > { %488 = vrot.lane.b32.xlu1 %v962_v2, %s993_s29  ;;  %276 = vrot.lane.b32.xlu0 %v962_v2, %s994_s30 }
  0x16   : > { %490 = vrot.lane.b32.xlu1 %v964_v3, %s993_s29  ;;  %278 = vrot.lane.b32.xlu0 %v964_v3, %s994_s30 }
  0x1a   : > { %611 = vrot.lane.b32.xlu1 %v964_v3, %s995_s6  ;;  %609 = vrot.lane.b32.xlu0 %v962_v2, %s995_s6  ;;  %v863_v3 = vunpack.c.h.bf16 %v861_v58 }
  0x1e   : > { %709 = vperm.xlu0 %960, %v227_v4   ;;  %714 = vperm.xlu1 %961, %v228_v5  }
  0x84   : > { %v489_v7 = vpop.permute.xlu1 %488  ;;  %v277_v8 = vpop.permute.xlu0 %276 }
  0x88   : > { %v491_v9 = vpop.permute.xlu1 %490  ;;  %v279_v10 = vpop.permute.xlu0 %278 }
  0x89   : > { %v281_v11 = vsel %vm280_vm1, %v277_v8, %v279_v10  ;;  %v493_v12 = vsel %vm492_vm2, %v489_v7, %v491_v9 }
  0x8a   : > { %884 = vmatprep.subr.bf16.mxu1 %v281_v11  ;;  %904 = vmatprep.subr.bf16.mxu0 %v493_v12 }
  0x8b   : > { %885 = vmatpush3.bf16.msra.mxu1 %v281_v11  ;;  %905 = vmatpush3.bf16.msra.mxu0 %v493_v12 }
  0x8c   : > { %v612_v15 = vpop.permute.xlu1 %611  ;;  %v610_v16 = vpop.permute.xlu0 %609  ;;  %894 = vmatprep.subr.bf16.mxu1 %v962_v2 }
  0x8d   : > { %v614_v18 = vsel %vm613_vm3, %v610_v16, %v612_v15  ;;  %v735_v15 = vstv %s734_s17 }
  0x8e   : > { %887 = vmatmul.mubr.msk.bf16.vlgmr.msra.gmra.mrb[0].mxu1 %vm283_vm0, %v967_v13  ;;  %907 = vmatmul.mubr.msk.bf16.vlgmr.msra.gmra.mrb[0].mxu0 %vm283_vm0, %v968_v14 }
  0x8f   : > { %914 = vmatprep.subr.bf16.mxu0 %v614_v18  ;;  %895 = vmatpush3.bf16.msra.mxu1 %v962_v2 }
  0x90   : > { %915 = vmatpush3.bf16.msra.mxu0 %v614_v18  ;;  %890 = vmatprep.mubr.msk.bf16.mxu1 %vm283_vm0, %v969_v17 }
  0x91   : > { %910 = vmatprep.mubr.msk.bf16.mxu0 %vm283_vm0, %v970_v19 }
  0x96   : > { %891 = vmatmul.mubr.msk.bf16.gmra.mrb[4].mxu1 %vm283_vm0, %v971_v20  ;;  %911 = vmatmul.mubr.msk.bf16.gmra.mrb[4].mxu0 %vm283_vm0, %v972_v21 }
  0x97   : > { %896 = vmatprep.mubr.msk.bf16.mxu1 %vm283_vm0, %v973_v22  ;;  %916 = vmatprep.mubr.msk.bf16.mxu0 %vm283_vm0, %v974_v23 }
  0x9d   : > { %v710_v57 = vpop.permute.xlu0 %709  ;;  %v715_v61 = vpop.permute.xlu1 %714 }
  0x9e   : > { %897 = vmatmul.mubr.msk.bf16.vlgmr.msra.gmra.mrb[0].mxu1 %vm283_vm0, %v975_v24  ;;  %917 = vmatmul.mubr.msk.bf16.vlgmr.msra.gmra.mrb[0].mxu0 %vm283_vm0, %v976_v25 }
  0x9f   : > { %900 = vmatprep.mubr.msk.bf16.mxu1 %vm283_vm0, %v977_v26  ;;  %920 = vmatprep.mubr.msk.bf16.mxu0 %vm283_vm0, %v978_v27 }
  0xa6   : > { %901 = vmatmul.mubr.msk.bf16.gmra.mrb[4].mxu1 %vm283_vm0, %v979_v28  ;;  %921 = vmatmul.mubr.msk.bf16.gmra.mrb[4].mxu0 %vm283_vm0, %v980_v29 }
 0x171   : > { %v898_v30 = vpop.f32.mrb[0].mxu1  ;;  %v918_v31 = vpop.f32.mrb[0].mxu0 }
 0x172   : > { %v924_v32 = vadd.f32 %v918_v31, %v898_v30  ;;  %v428_v33 = vpop.f32.mrb[1].mxu1  ;;  %v662_v34 = vpop.f32.mrb[1].mxu0 }
 0x173   : > { %v925_v35 = vadd.f32 %v662_v34, %v428_v33  ;;  %v899_v36 = vpop.f32.mrb[2].mxu1  ;;  %v919_v37 = vpop.f32.mrb[2].mxu0 }
 0x174   : > { %v926_v38 = vadd.f32 %v919_v37, %v899_v36  ;;  %v431_v39 = vpop.f32.mrb[3].mxu1  ;;  %v665_v40 = vpop.f32.mrb[3].mxu0 }
 0x175   : > { %v701_v41 = vmax.f32 %v925_v35, %v924_v32  ;;  %v927_v42 = vadd.f32 %v665_v40, %v431_v39 }
 0x177   : > { %v702_v43 = vmax.f32 %v927_v42, %v926_v38 }
 0x179   : > { %v902_v44 = vpop.f32.mrb[4].mxu1  ;;  %v922_v45 = vpop.f32.mrb[4].mxu0 }
 0x17a   : > { %v928_v46 = vadd.f32 %v922_v45, %v902_v44  ;;  %v444_v47 = vpop.f32.mrb[5].mxu1  ;;  %v678_v48 = vpop.f32.mrb[5].mxu0 }
 0x17b   : > { %v929_v49 = vadd.f32 %v678_v48, %v444_v47  ;;  %v903_v50 = vpop.f32.mrb[6].mxu1  ;;  %v923_v51 = vpop.f32.mrb[6].mxu0 }
 0x17c   : > { %v930_v52 = vadd.f32 %v923_v51, %v903_v50  ;;  %v447_v53 = vpop.f32.mrb[7].mxu1  ;;  %v681_v54 = vpop.f32.mrb[7].mxu0 }
 0x17d   : > { %v703_v55 = vmax.f32 %v929_v49, %v928_v46  ;;  %v931_v56 = vadd.f32 %v681_v54, %v447_v53 }
 0x17f   : > { %v704_v59 = vmax.f32 %v931_v56, %v930_v52  ;;  %v705_v60 = vmax.f32 %v701_v41, %v703_v55 }
 0x181   : > { %v717_v62 = vadd.f32 %v710_v57, %v705_v60  ;;  %v706_v63 = vmax.f32 %v702_v43, %v704_v59 }
 0x183   : > { %v719_v1 = vmax.f32 %v717_v62, 0.0  ;;  %v718_v2 = vadd.f32 %v715_v61, %v706_v63 }
 0x185   : > { %v720_v4 = vmax.f32 %v718_v2, 0.0  ;;  %v721_v5 = vmul.f32 %v862_v0, %v719_v1 }
 0x187   : > { %723 = vadd.xlane.f32.xlu1 %v721_v5  ;;  %v722_v6 = vmul.f32 %v863_v3, %v720_v4 }
 0x189   : > { %725 = vadd.xlane.f32.xlu0 %v722_v6 }
 0x214   : > { %v724_v7 = vpop.xlane.xlu1 %723 }
 0x216   : > { %v726_v8 = vpop.xlane.xlu0 %725 }
 0x217   : > { %v727_v9 = vadd.f32 %v726_v8, %v724_v7 }
 0x219   : > { %v728_v10 = vrot.slane %v727_v9, 4 }
 0x21b   : > { %v729_v11 = vadd.f32 %v728_v10, %v727_v9 }
 0x21d   : > { %v730_v12 = vrot.slane %v729_v11, 2 }
 0x21f   : > { %v731_v13 = vadd.f32 %v730_v12, %v729_v11 }
 0x221   : > { %v732_v14 = vrot.slane %v731_v13, 1 }
 0x223   : > { %v733_v16 = vadd.f32 %v732_v14, %v731_v13 }
 0x225   : > { %v736_v17 = vadd.f32 %v735_v15, %v733_v16 }
 0x227   : > { %v856_v18 = vmul.f32 -1.442695, %v736_v17 }
 0x229   : > { %981 = vpow2.f32 %v856_v18 }
 0x233   : > { %v982_v19 = vpop.eup %981 }
 0x234   : > { %v740_v20 = vadd.f32 1.0, %v982_v19 }
 0x236   : > { %983 = vrcp.f32 %v740_v20 }
 0x240   : > { %v984_v21 = vpop.eup %983 }
 0x241   : > { %743 = vst [vmem:[%s221_s22] sm:$0x1] %v984_v21 }
 0x242 PF: > { %s16_s20 = sadd.s32 1, %s991_s20  }
 0x243   : > { %p13_p4 = scmp.ge.s32.totalorder %s16_s20, 4  }
 0x245   :  { %15 = sbr.rel (!%p13_p4) target bundleno = 2 (0x2), region = 73 }

</bundles_post_ra>
